<compile_context>
chip_gen: v7x
topology: tpu7x:2x2x1
jax: 0.10.0
libtpu: 0.0.40
codegen_flags: <defaults>
</compile_context>

<pallas_src>
import jax
import jax.numpy as jnp
from jax.experimental import pallas as pl
from jax.experimental.pallas import tpu as pltpu


def _make_abr_kernel(eps: float, negative_slope: float, m_elems: int, compute_dtype):
    """Returns a Pallas kernel closure with static eps / slope / true element count."""
    inv_m = 1.0 / float(m_elems)
    # TODO(synk): M == 1 guard diverges from PyTorch (which yields inf/NaN unbiased var).
    unbiased_factor = float(m_elems) / float(m_elems - 1) if m_elems > 1 else 1.0

    def abr_kernel(x_ref, w_ref, b_ref, rm_ref, rv_ref, o_ref):
        # x_ref: (N, TC, HW_pad)    params: (TC, 1)
        x = x_ref[...]
        xf = x.astype(jnp.float32)

        # One-pass per-channel statistics over batch (axis 0) and spatial lanes (axis 2).
        # Zero padding (channels or HW) contributes 0 to both sums; dividing by the true
        # M keeps the statistics exact.
        s1 = jnp.sum(xf, axis=(0, 2), keepdims=True)              # (1, TC, 1)
        s2 = jnp.sum(xf * xf, axis=(0, 2), keepdims=True)         # (1, TC, 1)
        mu = s1 * inv_m
        var_b = jnp.maximum(s2 * inv_m - mu * mu, 0.0)            # biased (batch_norm)
        var_u = var_b * unbiased_factor                           # unbiased (torch .var)

        w = w_ref[...][None, :, :]                                # (1, TC, 1)
        b = b_ref[...][None, :, :]
        rm = rm_ref[...][None, :, :]
        rv = rv_ref[...][None, :, :]

        rstd_run = jax.lax.rsqrt(rv + eps)                        # 1/sqrt(running_var+eps)
        r = jnp.sqrt(var_u + eps) * rstd_run
        d = (mu - rm) * rstd_run

        w_eff = w * r                                             # renorm-scaled weight
        b_eff = b + w * d                                         # renorm-shifted bias

        # Fold normalization into a single per-channel scale/shift (tiny (1,TC,1) vectors).
        scale = jax.lax.rsqrt(var_b + eps) * w_eff
        shift = b_eff - mu * scale

        # Elementwise tail: one FMA + one max, in compute_dtype (bf16 for bf16 inputs on
        # v6e/v7x halves the full-tile VMEM footprint; f32 otherwise).
        scale_c = scale.astype(compute_dtype)
        shift_c = shift.astype(compute_dtype)
        y = x.astype(compute_dtype) * scale_c + shift_c
        out = jnp.maximum(y, y * jnp.asarray(negative_slope, compute_dtype))  # leaky_relu
        o_ref[...] = out.astype(o_ref.dtype)

    return abr_kernel


def _sublane_for(dtype):
    """Sublane packing of the channel axis: 8 for f32, 16 for bf16, 32 for int8/fp8."""
    itemsize = jnp.dtype(dtype).itemsize
    return max(8, 32 // max(itemsize, 1))


def _vmem_plan():
    """Derive (vmem_limit_bytes, per-block byte budget) from the chip's VMEM capacity."""
    phys = None
    try:
        info = pltpu.get_tpu_info()
        phys = getattr(info, "vmem_capacity_bytes", None)
    except Exception:
        phys = None
    if not phys:
        phys = 64 << 20  # conservative fallback = v7x per-TC VMEM
    vmem_limit = int(phys) * 2 // 3          # leave headroom for compiler scratch
    # Budget ~8 block-equivalents: 2x double-buffered input + 2x output blocks plus
    # full-tile elementwise temporaries.
    block_budget = max(vmem_limit // 8, 1 << 20)
    return int(vmem_limit), int(block_budget)


def _choose_channel_tile(N, C, HW_pad, itemsize, sublane, block_budget_bytes):
    """Channel tile: multiple of the sublane packing, block <= budget, and >= 2 grid
    blocks whenever C allows it (so v7x's two TensorCores both get work)."""
    per_channel_bytes = max(N * HW_pad * itemsize, 1)
    tc = (block_budget_bytes // per_channel_bytes) // sublane * sublane
    c_ceil = pl.cdiv(C, sublane) * sublane
    tc = min(max(tc, sublane), c_ceil)
    if c_ceil >= 2 * sublane:                # can we split into >= 2 blocks at all?
        half = (c_ceil // 2) // sublane * sublane
        tc = min(tc, max(half, sublane))
    return int(tc)


def inplace_abr_forward(x_nchw, weight, bias, running_mean, running_var,
                        eps=1e-5, activation_param=0.01):
    """x_nchw: (N, C, H, W). Returns leaky_relu(batch_renorm(x)) with same shape/dtype."""
    N, C, H, W = x_nchw.shape
    HW = H * W
    M = N * HW                                # TRUE element count for the statistics
    dtype = x_nchw.dtype
    itemsize = jnp.dtype(dtype).itemsize
    sublane = _sublane_for(dtype)

    # Lane-dense last dim: pad HW to a multiple of 128 (no-op when already aligned).
    HW_pad = pl.cdiv(HW, 128) * 128

    vmem_limit, block_budget = _vmem_plan()
    TC = _choose_channel_tile(N, C, HW_pad, itemsize, sublane, block_budget)
    C_pad = pl.cdiv(C, TC) * TC

    # Free, contiguous reshape: NCHW -> (N, C, H*W). No HBM transpose passes.
    x = x_nchw.reshape(N, C, HW)
    padded = (C_pad != C) or (HW_pad != HW)
    if padded:
        x = jnp.pad(x, ((0, 0), (0, C_pad - C), (0, HW_pad - HW)))

    w32 = weight.astype(jnp.float32)
    b32 = bias.astype(jnp.float32)
    rm32 = running_mean.astype(jnp.float32)
    rv32 = running_var.astype(jnp.float32)
    if C_pad != C:
        pad = C_pad - C
        w32 = jnp.pad(w32, (0, pad))                              # weight 0 -> padded out = 0
        b32 = jnp.pad(b32, (0, pad))
        rm32 = jnp.pad(rm32, (0, pad))
        rv32 = jnp.pad(rv32, (0, pad), constant_values=1.0)       # keep rsqrt well-defined

    def col(p):
        return p.reshape(C_pad, 1)

    compute_dtype = jnp.bfloat16 if dtype == jnp.bfloat16 else jnp.float32
    kernel = _make_abr_kernel(float(eps), float(activation_param), M, compute_dtype)

    n_blocks = C_pad // TC
    tensor_bytes = N * C_pad * HW_pad * itemsize
    cost = pl.CostEstimate(
        flops=10 * N * C_pad * HW_pad,
        transcendentals=2 * C_pad,
        bytes_accessed=2 * tensor_bytes + 4 * C_pad * 4,
    )

    # In-place semantics: alias x -> out when x reaches the kernel unpadded.
    aliases = {} if padded else {0: 0}

    out = pl.pallas_call(
        kernel,
        out_shape=jax.ShapeDtypeStruct((N, C_pad, HW_pad), dtype),
        grid=(n_blocks,),
        in_specs=[
            pl.BlockSpec((N, TC, HW_pad), lambda c: (0, c, 0)),
            pl.BlockSpec((TC, 1), lambda c: (c, 0)),
            pl.BlockSpec((TC, 1), lambda c: (c, 0)),
            pl.BlockSpec((TC, 1), lambda c: (c, 0)),
            pl.BlockSpec((TC, 1), lambda c: (c, 0)),
        ],
        out_specs=pl.BlockSpec((N, TC, HW_pad), lambda c: (0, c, 0)),
        compiler_params=pltpu.CompilerParams(
            dimension_semantics=("parallel",),    # megacore sharding on v7x; no-op on v5e/v6e
            vmem_limit_bytes=vmem_limit,
        ),
        cost_estimate=cost,
        input_output_aliases=aliases,
    )(x, col(w32), col(b32), col(rm32), col(rv32))

    # Drop channel / spatial padding; free reshape back to NCHW.
    if padded:
        out = out[:, :C, :HW]
    return out.reshape(N, C, H, W)

    # TODO(synk): running-stat update omitted — module default momentum=0.0 makes it a no-op.


def _reference(x, weight, bias, running_mean, running_var, eps=1e-5, slope=0.01):
    """Pure-JAX reference mirroring the PyTorch forward (training, renorm=True)."""
    N, C, H, W = x.shape
    M = N * H * W
    xt = jnp.transpose(x, (1, 0, 2, 3)).reshape(C, -1).astype(jnp.float32)
    mu = xt.mean(axis=1)
    var_b = ((xt - mu[:, None]) ** 2).mean(axis=1)
    var_u = var_b * M / (M - 1)
    running_std = jnp.sqrt(running_var + eps)
    r = jnp.sqrt(var_u + eps) / running_std
    d = (mu - running_mean) / running_std
    w = weight * r
    b = bias + weight * d
    y = (x.astype(jnp.float32) - mu[None, :, None, None]) / jnp.sqrt(
        var_b + eps)[None, :, None, None] * w[None, :, None, None] + b[None, :, None, None]
    return jnp.where(y >= 0, y, y * slope).astype(x.dtype)


if __name__ == "__main__":
    key = jax.random.PRNGKey(0)
    N, C, H, W = 2, 4, 16, 16
    x = jax.random.normal(key, (N, C, H, W), dtype=jnp.float32)

    # Deterministic parameter / buffer init, matching ABR.reset_parameters():
    weight = jnp.ones((C,), jnp.float32)          # affine scale
    bias = jnp.zeros((C,), jnp.float32)           # affine shift
    running_mean = jnp.zeros((C,), jnp.float32)
    running_var = jnp.ones((C,), jnp.float32)
    # momentum = 0.0 (module default) -> running-stat update is a no-op in the forward.

    out = inplace_abr_forward(x, weight, bias, running_mean, running_var)
    out = jax.block_until_ready(out)

    ref = _reference(x, weight, bias, running_mean, running_var)
    assert out.shape == x.shape and out.dtype == x.dtype
    assert jnp.allclose(out, ref, atol=1e-5, rtol=1e-5)

    print("KERNEL_OK")
</pallas_src>

<mosaic_0001>
module attributes {stable_mosaic.version = 11 : i64} {
  func.func @abr_kernel(%arg0: i32, %arg1: memref<2x8x256xf32, #tpu.memory_space<vmem>>, %arg2: memref<8x1xf32, #tpu.memory_space<vmem>>, %arg3: memref<8x1xf32, #tpu.memory_space<vmem>>, %arg4: memref<8x1xf32, #tpu.memory_space<vmem>>, %arg5: memref<8x1xf32, #tpu.memory_space<vmem>>, %arg6: memref<2x8x256xf32, #tpu.memory_space<vmem>>) attributes {dimension_semantics = [#tpu.dimension_semantics<parallel>], iteration_bounds = array<i64: 1>, scalar_prefetch = 0 : i64, scratch_operands = 0 : i64, tpu.core_type = #tpu.core_type<tc>, window_params = [{transform_indices = @transform_0, window_bounds = array<i64: 2, 8, 256>}, {transform_indices = @transform_1, window_bounds = array<i64: 8, 1>}, {transform_indices = @transform_2, window_bounds = array<i64: 8, 1>}, {transform_indices = @transform_3, window_bounds = array<i64: 8, 1>}, {transform_indices = @transform_4, window_bounds = array<i64: 8, 1>}, {transform_indices = @transform_5, window_bounds = array<i64: 2, 8, 256>}]} {
    %c0 = arith.constant 0 : index
    %c0_0 = arith.constant 0 : index
    %c0_1 = arith.constant 0 : index
    %0 = vector.load %arg1[%c0, %c0_0, %c0_1] : memref<2x8x256xf32, #tpu.memory_space<vmem>>, vector<2x8x256xf32>
    %cst = arith.constant dense<0.000000e+00> : vector<8xf32>
    %1 = vector.multi_reduction <add>, %0, %cst [0, 2] : vector<2x8x256xf32> to vector<8xf32>
    %2 = vector.shape_cast %1 : vector<8xf32> to vector<1x8x1xf32>
    %3 = arith.mulf %0, %0 : vector<2x8x256xf32>
    %cst_2 = arith.constant dense<0.000000e+00> : vector<8xf32>
    %4 = vector.multi_reduction <add>, %3, %cst_2 [0, 2] : vector<2x8x256xf32> to vector<8xf32>
    %5 = vector.shape_cast %4 : vector<8xf32> to vector<1x8x1xf32>
    %cst_3 = arith.constant 0.001953125 : f32
    %6 = vector.broadcast %cst_3 : f32 to vector<1x8x1xf32>
    %7 = arith.mulf %2, %6 : vector<1x8x1xf32>
    %cst_4 = arith.constant 0.001953125 : f32
    %8 = vector.broadcast %cst_4 : f32 to vector<1x8x1xf32>
    %9 = arith.mulf %5, %8 : vector<1x8x1xf32>
    %10 = arith.mulf %7, %7 : vector<1x8x1xf32>
    %11 = arith.subf %9, %10 : vector<1x8x1xf32>
    %cst_5 = arith.constant 0.000000e+00 : f32
    %12 = vector.broadcast %cst_5 : f32 to vector<1x8x1xf32>
    %13 = arith.maximumf %11, %12 : vector<1x8x1xf32>
    %cst_6 = arith.constant 1.00195694 : f32
    %14 = vector.broadcast %cst_6 : f32 to vector<1x8x1xf32>
    %15 = arith.mulf %13, %14 : vector<1x8x1xf32>
    %c0_7 = arith.constant 0 : index
    %c0_8 = arith.constant 0 : index
    %16 = vector.load %arg2[%c0_7, %c0_8] : memref<8x1xf32, #tpu.memory_space<vmem>>, vector<8x1xf32>
    %17 = vector.shape_cast %16 : vector<8x1xf32> to vector<1x8x1xf32>
    %c0_9 = arith.constant 0 : index
    %c0_10 = arith.constant 0 : index
    %18 = vector.load %arg3[%c0_9, %c0_10] : memref<8x1xf32, #tpu.memory_space<vmem>>, vector<8x1xf32>
    %19 = vector.shape_cast %18 : vector<8x1xf32> to vector<1x8x1xf32>
    %c0_11 = arith.constant 0 : index
    %c0_12 = arith.constant 0 : index
    %20 = vector.load %arg4[%c0_11, %c0_12] : memref<8x1xf32, #tpu.memory_space<vmem>>, vector<8x1xf32>
    %21 = vector.shape_cast %20 : vector<8x1xf32> to vector<1x8x1xf32>
    %c0_13 = arith.constant 0 : index
    %c0_14 = arith.constant 0 : index
    %22 = vector.load %arg5[%c0_13, %c0_14] : memref<8x1xf32, #tpu.memory_space<vmem>>, vector<8x1xf32>
    %23 = vector.shape_cast %22 : vector<8x1xf32> to vector<1x8x1xf32>
    %cst_15 = arith.constant 9.99999974E-6 : f32
    %24 = vector.broadcast %cst_15 : f32 to vector<1x8x1xf32>
    %25 = arith.addf %23, %24 : vector<1x8x1xf32>
    %26 = math.rsqrt %25 : vector<1x8x1xf32>
    %cst_16 = arith.constant 9.99999974E-6 : f32
    %27 = vector.broadcast %cst_16 : f32 to vector<1x8x1xf32>
    %28 = arith.addf %15, %27 : vector<1x8x1xf32>
    %29 = math.sqrt %28 : vector<1x8x1xf32>
    %30 = arith.mulf %29, %26 : vector<1x8x1xf32>
    %31 = arith.subf %7, %21 : vector<1x8x1xf32>
    %32 = arith.mulf %31, %26 : vector<1x8x1xf32>
    %33 = arith.mulf %17, %30 : vector<1x8x1xf32>
    %34 = arith.mulf %17, %32 : vector<1x8x1xf32>
    %35 = arith.addf %19, %34 : vector<1x8x1xf32>
    %cst_17 = arith.constant 9.99999974E-6 : f32
    %36 = vector.broadcast %cst_17 : f32 to vector<1x8x1xf32>
    %37 = arith.addf %13, %36 : vector<1x8x1xf32>
    %38 = math.rsqrt %37 : vector<1x8x1xf32>
    %39 = arith.mulf %38, %33 : vector<1x8x1xf32>
    %40 = arith.mulf %7, %39 : vector<1x8x1xf32>
    %41 = arith.subf %35, %40 : vector<1x8x1xf32>
    %42 = vector.broadcast %39 : vector<1x8x1xf32> to vector<2x8x256xf32>
    %43 = arith.mulf %0, %42 : vector<2x8x256xf32>
    %44 = vector.broadcast %41 : vector<1x8x1xf32> to vector<2x8x256xf32>
    %45 = arith.addf %43, %44 : vector<2x8x256xf32>
    %cst_18 = arith.constant 0.00999999977 : f32
    %46 = vector.broadcast %cst_18 : f32 to vector<2x8x256xf32>
    %47 = arith.mulf %45, %46 : vector<2x8x256xf32>
    %48 = arith.maximumf %45, %47 : vector<2x8x256xf32>
    %c0_19 = arith.constant 0 : index
    %c0_20 = arith.constant 0 : index
    %c0_21 = arith.constant 0 : index
    %49 = vector.load %arg6[%c0_19, %c0_20, %c0_21] : memref<2x8x256xf32, #tpu.memory_space<vmem>>, vector<2x8x256xf32>
    tpu.vector_store %arg6[%c0_19, %c0_20, %c0_21], %48 {strides = array<i32>} : memref<2x8x256xf32, #tpu.memory_space<vmem>>, vector<2x8x256xf32>,
    return
  }
  func.func @transform_0(%arg0: i32) -> (i32, i32, i32) {
    %c0_i32 = arith.constant 0 : i32
    %c0_i32_0 = arith.constant 0 : i32
    %c0_i32_1 = arith.constant 0 : i32
    return %c0_i32, %arg0, %c0_i32_0 : i32, i32, i32
  }
  func.func @transform_1(%arg0: i32) -> (i32, i32) {
    %c0_i32 = arith.constant 0 : i32
    %c0_i32_0 = arith.constant 0 : i32
    return %arg0, %c0_i32 : i32, i32
  }
  func.func @transform_2(%arg0: i32) -> (i32, i32) {
    %c0_i32 = arith.constant 0 : i32
    %c0_i32_0 = arith.constant 0 : i32
    return %arg0, %c0_i32 : i32, i32
  }
  func.func @transform_3(%arg0: i32) -> (i32, i32) {
    %c0_i32 = arith.constant 0 : i32
    %c0_i32_0 = arith.constant 0 : i32
    return %arg0, %c0_i32 : i32, i32
  }
  func.func @transform_4(%arg0: i32) -> (i32, i32) {
    %c0_i32 = arith.constant 0 : i32
    %c0_i32_0 = arith.constant 0 : i32
    return %arg0, %c0_i32 : i32, i32
  }
  func.func @transform_5(%arg0: i32) -> (i32, i32, i32) {
    %c0_i32 = arith.constant 0 : i32
    %c0_i32_0 = arith.constant 0 : i32
    %c0_i32_1 = arith.constant 0 : i32
    return %c0_i32, %arg0, %c0_i32_0 : i32, i32, i32
  }
}

</mosaic_0001>

<bundles_post_ra>
// kernel: tpu_custom_call.1
= control target key start
LH: loop header
LB: loop body
LE: loop exit
PB: predicated region body
PF: predicated region fallthrough
CT: control target
= control target key end

     0   :  { %s222_s0 = inlined_call_operand.vmem [shape: f32[2,8,256], index: 0, kind: input, shape index: {}]   ;;  %s223_s1 = inlined_call_operand.vmem [shape: f32[8,1], index: 1, kind: input, shape index: {}]   ;;  %s224_s2 = inlined_call_operand.vmem [shape: f32[8,1], index: 2, kind: input, shape index: {}]   ;;  %s225_s3 = inlined_call_operand.vmem [shape: f32[8,1], index: 3, kind: input, shape index: {}]   ;;  %s226_s4 = inlined_call_operand.vmem [shape: f32[8,1], index: 4, kind: input, shape index: {}]   ;;  %s227_s5 = inlined_call_operand.hbm [shape: f32[2,8,256], index: 5, kind: output, shape index: {}]  }
   0x1   :  { %v21_v0 = vld [vmem:[%s222_s0] sm:$0xff]  ;;  %v22_v1 = vld [vmem:[%s222_s0 + $0x8] sm:$0xff]  ;;  %v23_v2 = vld [vmem:[%s222_s0 + $0x10] sm:$0xff] }
   0x2   :  { %v25_v3 = vadd.f32 %v22_v1, %v21_v0  ;;  %v30_v4 = vmul.f32 %v21_v0, %v21_v0  ;;  %v31_v5 = vmul.f32 %v22_v1, %v22_v1  ;;  %v32_v6 = vmul.f32 %v23_v2, %v23_v2  ;;  %v24_v7 = vld [vmem:[%s222_s0 + $0x18] sm:$0xff] }
   0x3   :  { %10 = vsyncpa [#allocation3], 0  ;;  %v33_v9 = vmul.f32 %v24_v7, %v24_v7  ;;  %v152_v14 = vmov 0   ;;  %v48_v20 = vld [vmem:[%s226_s4] sm:$0xff] }
   0x4   :  { %v26_v8 = vadd.f32 %v25_v3, %v23_v2  ;;  %v34_v10 = vadd.f32 %v31_v5, %v30_v4  ;;  %120 = vset.pattern.permute.xlu1 %v152_v14  ;;  %121 = vset.pattern.permute.xlu0 %v152_v14  ;;  %v49_v23 = vadd.f32 1e-05, %v48_v20  ;;  %v47_v27 = vld [vmem:[%s225_s3] sm:$0xff] }
   0x5   :  { %v45_v35 = vld [vmem:[%s223_s1] sm:$0xff]  ;;  %s153_s1 = smov [#allocation2]  }
   0x6   :  { %v27_v11 = vadd.f32 %v26_v8, %v24_v7  ;;  %v35_v12 = vadd.f32 %v34_v10, %v32_v6  ;;  %122 = vrsqrt.f32 %v49_v23  ;;  %v46_v41 = vld [vmem:[%s224_s2] sm:$0xff]  ;;  %s105_s6 = sshll.u32 %s153_s1, 4  ;;  %s106_s6 = int_to_ptr.vmem [resolvable:$true] %s105_s6 }
   0x7   :  { %s128_s2 = scalar_lea.vmem %s106_s6, 512  ;;  %p133_p1 = scmp.lt.s32.totalorder %s106_s6, %s106_s6 }
   0x8   :  { %28 = vadd.xlane.f32.xlu0 %v27_v11  ;;  %v36_v13 = vadd.f32 %v35_v12, %v33_v9  ;;  %p129_p0 = scmp.ne.s32.totalorder %s106_s6, %s128_s2  ;;  %p134_p2 = scmp.lt.s32.totalorder %s128_s2, %s128_s2 }
   0xa   :  { %p135_p3 = por %p134_p2, %p133_p1 }
   0xc   :  { %37 = vadd.xlane.f32.xlu0 %v36_v13  ;;  %p136_p4 = pnand %p135_p3, %p129_p0 }
  0x10   :  { %v123_v28 = vpop.eup %122 }
  0x95   :  { %v29_v15 = vpop.xlane.xlu0 %28 }
  0x96   :  { %v39_v16 = vmul.f32 0.001953125, %v29_v15 }
  0x98   :  { %v41_v18 = vmul.f32 %v39_v16, %v39_v16  ;;  %v60_v29 = vsub.f32 %v39_v16, %v47_v27 }
  0x99   :  { %v38_v17 = vpop.xlane.xlu0 %37 }
  0x9a   :  { %v40_v19 = vmul.f32 0.001953125, %v38_v17  ;;  %v61_v33 = vmul.f32 %v123_v28, %v60_v29 }
  0x9c   :  { %v42_v21 = vsub.f32 %v40_v19, %v41_v18  ;;  %v63_v39 = vmul.f32 %v61_v33, %v45_v35 }
  0x9e   :  { %v43_v22 = vmax.f32 %v42_v21, 0.0  ;;  %v64_v44 = vadd.f32 %v63_v39, %v46_v41 }
  0xa0   :  { %v44_v24 = vmul.f32 1.0019569, %v43_v22  ;;  %v65_v26 = vadd.f32 1e-05, %v43_v22 }
  0xa2   :  { %v51_v25 = vadd.f32 1e-05, %v44_v24 }
  0xa4   :  { %124 = vrsqrt.f32 %v51_v25  ;;  %vm54_vm0 = vcmp.eq.f32.partialorder %v51_v25, inf  ;;  %v57_v32 = vand.u32 2147483648, %v51_v25  ;;  %vm56_vm1 = vcmp.eq.f32.partialorder %v51_v25, 0.0 }
  0xa5   :  { %126 = vrsqrt.f32 %v65_v26 }
  0xae   :  { %v125_v30 = vpop.eup %124 }
  0xaf   :  { %v53_v31 = vmul.f32 %v125_v30, %v51_v25  ;;  %v127_v40 = vpop.eup %126 }
  0xb1   :  { %v55_v34 = vsel %vm54_vm0, %v51_v25, %v53_v31 }
  0xb2   :  { %v58_v36 = vsel %vm56_vm1, %v57_v32, %v55_v34 }
  0xb3   :  { %v59_v37 = vmul.f32 %v123_v28, %v58_v36 }
  0xb5   :  { %v62_v38 = vmul.f32 %v59_v37, %v45_v35 }
  0xb7   :  { %v67_v42 = vmul.f32 %v127_v40, %v62_v38 }
  0xb9   :  { %72 = vperm.xlu1 %120, %v67_v42   ;;  %v68_v43 = vmul.f32 %v67_v42, %v39_v16 }
  0xbb   :  { %v69_v45 = vsub.f32 %v64_v44, %v68_v43 }
  0xbd   :  { %81 = vperm.xlu1 %120, %v69_v45  }
 0x138   :  { %v73_v46 = vpop.permute.xlu1 %72 }
 0x139   :  { %v75_v47 = vmul.f32 %v73_v46, %v21_v0  ;;  %v76_v48 = vmul.f32 %v73_v46, %v22_v1  ;;  %v77_v49 = vmul.f32 %v73_v46, %v23_v2  ;;  %v78_v50 = vmul.f32 %v73_v46, %v24_v7 }
 0x13c   :  { %v82_v51 = vpop.permute.xlu1 %81 }
 0x13d   :  { %v84_v52 = vadd.f32 %v82_v51, %v75_v47  ;;  %v85_v53 = vadd.f32 %v82_v51, %v76_v48  ;;  %v86_v54 = vadd.f32 %v82_v51, %v77_v49  ;;  %v87_v55 = vadd.f32 %v82_v51, %v78_v50 }
 0x13f   :  { %v88_v56 = vmul.f32 0.01, %v84_v52  ;;  %v89_v57 = vmul.f32 0.01, %v85_v53  ;;  %v90_v58 = vmul.f32 0.01, %v86_v54 }
 0x140   :  { %v91_v59 = vmul.f32 0.01, %v87_v55 }
 0x141   :  { %v92_v60 = vmax.f32 %v84_v52, %v88_v56  ;;  %v93_v61 = vmax.f32 %v85_v53, %v89_v57  ;;  %v94_v62 = vmax.f32 %v86_v54, %v90_v58 }
 0x142   :  { %v95_v63 = vmax.f32 %v87_v55, %v91_v59 }
 0x143   :  { %96 = vst [vmem:[#allocation2] sm:$0xff] %v92_v60  ;;  %97 = vst [vmem:[#allocation2 + $0x8] sm:$0xff] %v93_v61 }
 0x144   :  { %98 = vst [vmem:[#allocation2 + $0x10] sm:$0xff] %v94_v62  ;;  %99 = vst [vmem:[#allocation2 + $0x18] sm:$0xff] %v95_v63 }
 0x145   :  { %139 = shalt.err (!%p136_p4)
}
 0x146   :  { %s140_s9 = scalar_lea.hbm %s227_s5, 512 }
 0x147   :  { %p141_p5 = scmp.ne.s32.totalorder %s227_s5, %s140_s9  ;;  %p144_p6 = scmp.lt.u32.totalorder %s140_s9, %s227_s5 }
 0x149   :  { %p146_p7 = pnand %p144_p6, %p141_p5 }
 0x14b   :  { %149 = shalt.err (!%p146_p7)
}
 0x14c   :  { %s154_s14 = smov 256   ;;  %s155_s15 = smov 16  }
 0x14d   :  { %111 = dma.vmem_to_hbm [thread:$0]  %s106_s6, 512, %s227_s5, [#allocation3], %s154_s14, %s154_s14, %s155_s15  }
 0x14e   :  { %150 = dma.done.wait [#allocation3], 512  }
 0x14f   :  { %151 = vsyncadd [#allocation3], 4294966784 }
 0x150   :  { %115 = vsyncpa [#allocation3], 1 }

</bundles_post_ra>
